<compile_context>
chip_gen: v5e
topology: v5e:2x2
jax: 0.10.0
libtpu: 0.0.40
codegen_flags: <defaults>
</compile_context>

<pallas_src>
import jax
import jax.numpy as jnp
from jax.experimental import pallas as pl
from jax.experimental.pallas import tpu as pltpu

NEG_SLOPE = 0.01      # nn.LeakyReLU default negative_slope
LANE = 128
BF16_SUBLANE = 16     # bf16 sublane tile height


def _round_up(x, m):
    return ((x + m - 1) // m) * m


def _leaky_relu_f32(h):
    # mul + max instead of compare + select.
    return jnp.maximum(h, NEG_SLOPE * h)


def _num_tensorcores_per_chip():
    """Best-effort TensorCores-per-chip (v7x and v4/v5p megacore have 2)."""
    try:
        kind = jax.devices()[0].device_kind.lower()
    except Exception:
        return 1
    if any(tag in kind for tag in ("v7", "7x", "v4", "v5p")):
        return 2
    return 1


def make_dqn_kernel(obs_p, hid_p):
    """Build the kernel with static row offsets into the packed weight slab."""
    o1 = obs_p                # end of W1 rows
    o2 = o1 + hid_p           # end of W2 rows
    o3 = o2 + hid_p           # end of W3 rows
    o4 = o3 + hid_p           # end of W4 rows
    # Every slice start/stop must sit on a bf16 (16,128) tile boundary so
    # Mosaic never materializes a re-layout copy of the weight slab.
    for off in (o1, o2, o3, o4):
        assert off % BF16_SUBLANE == 0, f"unaligned weight-slab offset {off}"
    assert hid_p % LANE == 0, "hidden width must be lane-dense (multiple of 128)"

    def dqn_kernel(x_ref, w_ref, b_ref, out_ref):
        # x_ref:  (tile_b, obs_p)  f32   -- cast to bf16 in-kernel (VPU pack)
        # w_ref:  (o4, hid_p)      bf16  -- packed [W1; W2; W3; W4], 128-lane padded
        # b_ref:  (4, hid_p)       f32   -- one bias row per layer, 128-lane padded
        # out_ref:(tile_b, hid_p)  f32   -- lane-dense Q slab (cols >= action_space are 0)
        x = x_ref[...].astype(jnp.bfloat16)
        b = b_ref[...]          # hoist all biases once

        # Layer 1: (tile_b, obs_p) @ (obs_p, 128) -> f32 acc, bias+LeakyReLU in f32.
        h = jnp.dot(x, w_ref[0:o1, :], preferred_element_type=jnp.float32)
        h = _leaky_relu_f32(h + b[0:1, :])
        # TODO(synk): Dropout is identity here (eval-mode forward); train-mode
        # stochastic dropout masks are intentionally not reproduced.
        h = h.astype(jnp.bfloat16)

        # Layer 2
        h = jnp.dot(h, w_ref[o1:o2, :], preferred_element_type=jnp.float32)
        h = _leaky_relu_f32(h + b[1:2, :])
        h = h.astype(jnp.bfloat16)

        # Layer 3
        h = jnp.dot(h, w_ref[o2:o3, :], preferred_element_type=jnp.float32)
        h = _leaky_relu_f32(h + b[2:3, :])
        h = h.astype(jnp.bfloat16)

        # Layer 4 (no activation) — lane-dense 128-wide unmasked store.
        out_ref[...] = (jnp.dot(h, w_ref[o3:o4, :],
                                preferred_element_type=jnp.float32) + b[3:4, :])

    return dqn_kernel


def pack_params(params, obs_p, hid_p):
    """Pack 4x(W, b) into one bf16 weight slab and one f32 bias slab (done once)."""
    assert obs_p % BF16_SUBLANE == 0 and hid_p % BF16_SUBLANE == 0

    def pad_w(w, rows, cols):
        return jnp.zeros((rows, cols), jnp.float32).at[:w.shape[0], :w.shape[1]].set(w)

    def pad_b(b, cols):
        b = b.reshape(1, -1)
        return jnp.zeros((1, cols), jnp.float32).at[:, :b.shape[1]].set(b)

    (w1, b1), (w2, b2), (w3, b3), (w4, b4) = params
    w_slab = jnp.concatenate(
        [pad_w(w1, obs_p, hid_p),
         pad_w(w2, hid_p, hid_p),
         pad_w(w3, hid_p, hid_p),
         pad_w(w4, hid_p, hid_p)], axis=0).astype(jnp.bfloat16)
    b_slab = jnp.concatenate(
        [pad_b(b1, hid_p), pad_b(b2, hid_p),
         pad_b(b3, hid_p), pad_b(b4, hid_p)], axis=0)  # (4, hid_p) f32
    return w_slab, b_slab


def dqn_forward(x, w_slab, b_slab, *, observation_space, action_space,
                obs_p, hid_p, tile_b=None):
    """x: (B, obs) f32. Returns (B, action_space) f32 Q-values (eval-mode forward)."""
    batch = x.shape[0]

    if tile_b is None:
        # One maximal tile per TensorCore: grid=(1,) on v5e/v6e, (2,) on v7x.
        num_tc = _num_tensorcores_per_chip()
        b_pad = _round_up(batch, 8 * num_tc)
        tile_b = b_pad // num_tc
    else:
        b_pad = _round_up(batch, tile_b)
    assert tile_b % 8 == 0

    rows = w_slab.shape[0]

    # Fast path: no wrapper-side pad or cast — kernel casts f32 -> bf16 in VMEM.
    if batch == b_pad and observation_space == obs_p:
        xp = x
    else:
        xp = jnp.zeros((b_pad, obs_p), jnp.float32)
        xp = xp.at[:batch, :observation_space].set(x)

    grid = (b_pad // tile_b,)

    # Advisory cost estimate so XLA overlaps surrounding HLO with this call.
    flops = 2 * b_pad * (obs_p * hid_p + 3 * hid_p * hid_p)
    bytes_accessed = (b_pad * obs_p * 4          # x (f32)
                      + rows * hid_p * 2         # weight slab (bf16)
                      + 4 * hid_p * 4            # bias slab (f32)
                      + b_pad * hid_p * 4)       # output (f32)
    cost = pl.CostEstimate(flops=flops, transcendentals=0,
                           bytes_accessed=bytes_accessed)

    out_padded = pl.pallas_call(
        make_dqn_kernel(obs_p, hid_p),
        out_shape=jax.ShapeDtypeStruct((b_pad, hid_p), jnp.float32),
        grid_spec=pltpu.PrefetchScalarGridSpec(
            num_scalar_prefetch=0,
            grid=grid,
            in_specs=[
                # Batch-tiled activations (f32, cast inside the kernel).
                pl.BlockSpec((tile_b, obs_p), lambda i: (i, 0)),
                # Packed weights / biases: grid-resident (same block every step).
                pl.BlockSpec((rows, hid_p), lambda i: (0, 0)),
                pl.BlockSpec((4, hid_p), lambda i: (0, 0)),
            ],
            out_specs=pl.BlockSpec((tile_b, hid_p), lambda i: (i, 0)),
        ),
        compiler_params=pltpu.CompilerParams(
            dimension_semantics=("parallel",)),
        cost_estimate=cost,
    )(xp, w_slab, b_slab)

    # NOTE: rows >= batch and lanes >= action_space of the padded slab contain
    # padding garbage / zeros; slice them away before returning.
    return out_padded[:batch, :action_space]


def init_params(key, observation_space, neurons_per_layer, action_space):
    """Deterministic PyTorch-Linear-style init: U(-1/sqrt(fan_in), 1/sqrt(fan_in))."""
    dims = [observation_space,
            neurons_per_layer, neurons_per_layer, neurons_per_layer,
            action_space]
    params = []
    for i in range(4):
        fan_in, fan_out = dims[i], dims[i + 1]
        key, kw, kb = jax.random.split(key, 3)
        bound = 1.0 / jnp.sqrt(jnp.float32(fan_in))
        w = jax.random.uniform(kw, (fan_in, fan_out), jnp.float32, -bound, bound)
        b = jax.random.uniform(kb, (1, fan_out), jnp.float32, -bound, bound)
        params.append((w, b))
    return params


def reference_forward(x, params):
    """Pure-JAX reference mirroring the kernel's bf16-in / f32-accumulate matmuls."""
    h = x
    for i, (w, b) in enumerate(params):
        h = jnp.dot(h.astype(jnp.bfloat16), w.astype(jnp.bfloat16),
                    preferred_element_type=jnp.float32) + b.reshape(1, -1)
        if i < 3:
            h = jnp.maximum(h, NEG_SLOPE * h)
    return h


if __name__ == "__main__":
    observation_space = 16
    neurons_per_layer = 32
    action_space = 4
    batch = 256   # multiple of 8*num_tc -> fast path (no wrapper pad/cast)

    obs_p = _round_up(observation_space, BF16_SUBLANE)  # bf16 sublane-aligned K
    hid_p = LANE                                        # lane-dense hidden/output width

    key = jax.random.PRNGKey(0)
    key_x, key_p = jax.random.split(key)

    x = jax.random.normal(key_x, (batch, observation_space), jnp.float32)
    params = init_params(key_p, observation_space, neurons_per_layer, action_space)
    w_slab, b_slab = pack_params(params, obs_p, hid_p)

    out = dqn_forward(x, w_slab, b_slab,
                      observation_space=observation_space,
                      action_space=action_space,
                      obs_p=obs_p, hid_p=hid_p)
    jax.block_until_ready(out)

    ref = reference_forward(x, params)
    assert out.shape == (batch, action_space)
    assert jnp.allclose(out, ref, atol=1e-2, rtol=1e-2)

    print("KERNEL_OK")
</pallas_src>

<mosaic_0001>
module attributes {stable_mosaic.version = 11 : i64} {
  func.func @dqn_kernel(%arg0: i32, %arg1: memref<256x16xf32, #tpu.memory_space<vmem>>, %arg2: memref<400x128xbf16, #tpu.memory_space<vmem>>, %arg3: memref<4x128xf32, #tpu.memory_space<vmem>>, %arg4: memref<256x128xf32, #tpu.memory_space<vmem>>) attributes {dimension_semantics = [#tpu.dimension_semantics<parallel>], iteration_bounds = array<i64: 1>, scalar_prefetch = 0 : i64, scratch_operands = 0 : i64, tpu.core_type = #tpu.core_type<tc>, window_params = [{transform_indices = @transform_0, window_bounds = array<i64: 256, 16>}, {pipeline_mode = #tpu.pipeline_mode<synchronous>, transform_indices = @transform_1, window_bounds = array<i64: 400, 128>}, {pipeline_mode = #tpu.pipeline_mode<synchronous>, transform_indices = @transform_2, window_bounds = array<i64: 4, 128>}, {transform_indices = @transform_3, window_bounds = array<i64: 256, 128>}]} {
    %c0 = arith.constant 0 : index
    %c0_0 = arith.constant 0 : index
    %0 = vector.load %arg1[%c0, %c0_0] : memref<256x16xf32, #tpu.memory_space<vmem>>, vector<256x16xf32>
    %1 = arith.truncf %0 : vector<256x16xf32> to vector<256x16xbf16>
    %c0_1 = arith.constant 0 : index
    %c0_2 = arith.constant 0 : index
    %2 = vector.load %arg3[%c0_1, %c0_2] : memref<4x128xf32, #tpu.memory_space<vmem>>, vector<4x128xf32>
    %c0_3 = arith.constant 0 : index
    %c0_4 = arith.constant 0 : index
    %3 = vector.load %arg2[%c0_3, %c0_4] : memref<400x128xbf16, #tpu.memory_space<vmem>>, vector<16x128xbf16>
    %cst = arith.constant dense<0.000000e+00> : vector<256x128xf32>
    %4 = tpu.matmul %1, %3, %cst {dimension_numbers = #tpu.dot_dimension_numbers<[1], [0], [0], [1], [0, 0, 1, 1], [], []>} : vector<256x16xbf16>, vector<16x128xbf16>, vector<256x128xf32> -> vector<256x128xf32>
    %5 = vector.extract_strided_slice %2 {offsets = [0, 0], sizes = [1, 128], strides = [1, 1]} : vector<4x128xf32> to vector<1x128xf32>
    %6 = vector.broadcast %5 : vector<1x128xf32> to vector<256x128xf32>
    %7 = arith.addf %4, %6 : vector<256x128xf32>
    %cst_5 = arith.constant 0.00999999977 : f32
    %8 = vector.broadcast %cst_5 : f32 to vector<256x128xf32>
    %9 = arith.mulf %8, %7 : vector<256x128xf32>
    %10 = arith.maximumf %7, %9 : vector<256x128xf32>
    %11 = arith.truncf %10 : vector<256x128xf32> to vector<256x128xbf16>
    %c16 = arith.constant 16 : index
    %c0_6 = arith.constant 0 : index
    %12 = vector.load %arg2[%c16, %c0_6] : memref<400x128xbf16, #tpu.memory_space<vmem>>, vector<128x128xbf16>
    %cst_7 = arith.constant dense<0.000000e+00> : vector<256x128xf32>
    %13 = tpu.matmul %11, %12, %cst_7 {dimension_numbers = #tpu.dot_dimension_numbers<[1], [0], [0], [1], [0, 0, 1, 1], [], []>} : vector<256x128xbf16>, vector<128x128xbf16>, vector<256x128xf32> -> vector<256x128xf32>
    %14 = vector.extract_strided_slice %2 {offsets = [1, 0], sizes = [1, 128], strides = [1, 1]} : vector<4x128xf32> to vector<1x128xf32>
    %15 = vector.broadcast %14 : vector<1x128xf32> to vector<256x128xf32>
    %16 = arith.addf %13, %15 : vector<256x128xf32>
    %cst_8 = arith.constant 0.00999999977 : f32
    %17 = vector.broadcast %cst_8 : f32 to vector<256x128xf32>
    %18 = arith.mulf %17, %16 : vector<256x128xf32>
    %19 = arith.maximumf %16, %18 : vector<256x128xf32>
    %20 = arith.truncf %19 : vector<256x128xf32> to vector<256x128xbf16>
    %c144 = arith.constant 144 : index
    %c0_9 = arith.constant 0 : index
    %21 = vector.load %arg2[%c144, %c0_9] : memref<400x128xbf16, #tpu.memory_space<vmem>>, vector<128x128xbf16>
    %cst_10 = arith.constant dense<0.000000e+00> : vector<256x128xf32>
    %22 = tpu.matmul %20, %21, %cst_10 {dimension_numbers = #tpu.dot_dimension_numbers<[1], [0], [0], [1], [0, 0, 1, 1], [], []>} : vector<256x128xbf16>, vector<128x128xbf16>, vector<256x128xf32> -> vector<256x128xf32>
    %23 = vector.extract_strided_slice %2 {offsets = [2, 0], sizes = [1, 128], strides = [1, 1]} : vector<4x128xf32> to vector<1x128xf32>
    %24 = vector.broadcast %23 : vector<1x128xf32> to vector<256x128xf32>
    %25 = arith.addf %22, %24 : vector<256x128xf32>
    %cst_11 = arith.constant 0.00999999977 : f32
    %26 = vector.broadcast %cst_11 : f32 to vector<256x128xf32>
    %27 = arith.mulf %26, %25 : vector<256x128xf32>
    %28 = arith.maximumf %25, %27 : vector<256x128xf32>
    %29 = arith.truncf %28 : vector<256x128xf32> to vector<256x128xbf16>
    %c272 = arith.constant 272 : index
    %c0_12 = arith.constant 0 : index
    %30 = vector.load %arg2[%c272, %c0_12] : memref<400x128xbf16, #tpu.memory_space<vmem>>, vector<128x128xbf16>
    %cst_13 = arith.constant dense<0.000000e+00> : vector<256x128xf32>
    %31 = tpu.matmul %29, %30, %cst_13 {dimension_numbers = #tpu.dot_dimension_numbers<[1], [0], [0], [1], [0, 0, 1, 1], [], []>} : vector<256x128xbf16>, vector<128x128xbf16>, vector<256x128xf32> -> vector<256x128xf32>
    %32 = vector.extract_strided_slice %2 {offsets = [3, 0], sizes = [1, 128], strides = [1, 1]} : vector<4x128xf32> to vector<1x128xf32>
    %33 = vector.broadcast %32 : vector<1x128xf32> to vector<256x128xf32>
    %34 = arith.addf %31, %33 : vector<256x128xf32>
    %c0_14 = arith.constant 0 : index
    %c0_15 = arith.constant 0 : index
    %35 = vector.load %arg4[%c0_14, %c0_15] : memref<256x128xf32, #tpu.memory_space<vmem>>, vector<256x128xf32>
    tpu.vector_store %arg4[%c0_14, %c0_15], %34 {strides = array<i32>} : memref<256x128xf32, #tpu.memory_space<vmem>>, vector<256x128xf32>,
    return
  }
  func.func @transform_0(%arg0: i32) -> (i32, i32) {
    %c0_i32 = arith.constant 0 : i32
    %c0_i32_0 = arith.constant 0 : i32
    return %arg0, %c0_i32 : i32, i32
  }
  func.func @transform_1(%arg0: i32) -> (i32, i32) {
    %c0_i32 = arith.constant 0 : i32
    %c0_i32_0 = arith.constant 0 : i32
    %c0_i32_1 = arith.constant 0 : i32
    return %c0_i32, %c0_i32_0 : i32, i32
  }
  func.func @transform_2(%arg0: i32) -> (i32, i32) {
    %c0_i32 = arith.constant 0 : i32
    %c0_i32_0 = arith.constant 0 : i32
    %c0_i32_1 = arith.constant 0 : i32
    return %c0_i32, %c0_i32_0 : i32, i32
  }
  func.func @transform_3(%arg0: i32) -> (i32, i32) {
    %c0_i32 = arith.constant 0 : i32
    %c0_i32_0 = arith.constant 0 : i32
    return %arg0, %c0_i32 : i32, i32
  }
}

</mosaic_0001>

<bundles_post_ra>
// kernel: tpu_custom_call.1
= control target key start
LH: loop header
LB: loop body
LE: loop exit
PB: predicated region body
PF: predicated region fallthrough
CT: control target
= control target key end

     0   :  { %vm74_vm0 = vcmask 130048   ;;  %s1492_s0 = inlined_call_operand.vmem [shape: f32[256,16], index: 0, kind: input, shape index: {}]   ;;  %s1493_s1 = inlined_call_operand.vmem [shape: bf16[400,128], index: 1, kind: input, shape index: {}]   ;;  %s1494_s2 = inlined_call_operand.vmem [shape: f32[4,128], index: 2, kind: input, shape index: {}]   ;;  %s1495_s3 = inlined_call_operand.hbm [shape: f32[256,128], index: 3, kind: output, shape index: {}]  }
   0x1   :  { %v1080_v0 = vld [vmem:[%s1493_s1] sm:$0xff]  ;;  %v17_v2 = vld [vmem:[%s1492_s0 + $0x8] sm:$0xff] }
   0x2   :  { %v16_v1 = vld [vmem:[%s1492_s0] sm:$0xff]  ;;  %130 = vmatpush.bf16.msra.mxu0 %v1080_v0 }
   0x3   :  { %v48_v3 = vpack.c.bf16 %v17_v2, %v16_v1 }
   0x4   :  { %8 = vsyncpa [#allocation3], 0  ;;  %v18_v4 = vld [vmem:[%s1492_s0 + $0x10] sm:$0xff]  ;;  %v19_v5 = vld [vmem:[%s1492_s0 + $0x18] sm:$0xff]  ;;  %s952_s19 = sshll.u32 %s1495_s3, 4  ;;  %s1135_s20 = smov 128   ;;  %s953_s19 = int_to_ptr.hbm [resolvable:$true] %s952_s19 }
   0x5   :  { %968 = vmatmul.msk.bf16.vlgmr.msra.gmra.mxu0 %vm74_vm0, %v48_v3  ;;  %v49_v6 = vpack.c.bf16 %v19_v5, %v18_v4  ;;  %v20_v7 = vld [vmem:[%s1492_s0 + $0x20] sm:$0xff]  ;;  %v21_v8 = vld [vmem:[%s1492_s0 + $0x28] sm:$0xff]  ;;  %v22_v10 = vld [vmem:[%s1492_s0 + $0x30] sm:$0xff]  ;;  %s1136_s21 = smov 8  }
   0x6   :  { %v50_v9 = vpack.c.bf16 %v21_v8, %v20_v7  ;;  %v23_v11 = vld [vmem:[%s1492_s0 + $0x38] sm:$0xff]  ;;  %v24_v13 = vld [vmem:[%s1492_s0 + $0x40] sm:$0xff]  ;;  %v25_v14 = vld [vmem:[%s1492_s0 + $0x48] sm:$0xff] }
   0x7   :  { %v51_v12 = vpack.c.bf16 %v23_v11, %v22_v10  ;;  %v52_v15 = vpack.c.bf16 %v25_v14, %v24_v13  ;;  %v1088_v16 = vld [vmem:[%s1493_s1 + $0x40] sm:$0xff]  ;;  %v26_v17 = vld [vmem:[%s1492_s0 + $0x50] sm:$0xff]  ;;  %v27_v18 = vld [vmem:[%s1492_s0 + $0x58] sm:$0xff] }
   0x8   :  { %357 = vmatpush.bf16.msra.mxu1 %v1088_v16  ;;  %v53_v19 = vpack.c.bf16 %v27_v18, %v26_v17  ;;  %v1087_v20 = vld [vmem:[%s1493_s1 + $0x38] sm:$0xff]  ;;  %v1086_v21 = vld [vmem:[%s1493_s1 + $0x30] sm:$0xff]  ;;  %v1085_v22 = vld [vmem:[%s1493_s1 + $0x28] sm:$0xff] }
   0x9   :  { %v28_v23 = vld [vmem:[%s1492_s0 + $0x60] sm:$0xff]  ;;  %v29_v24 = vld [vmem:[%s1492_s0 + $0x68] sm:$0xff]  ;;  %v1083_v27 = vld [vmem:[%s1493_s1 + $0x18] sm:$0xff] }
   0xa   :  { %v54_v25 = vpack.c.bf16 %v29_v24, %v28_v23  ;;  %v1084_v26 = vld [vmem:[%s1493_s1 + $0x20] sm:$0xff]  ;;  %v1082_v28 = vld [vmem:[%s1493_s1 + $0x10] sm:$0xff]  ;;  %v1081_v29 = vld [vmem:[%s1493_s1 + $0x8] sm:$0xff] }
   0xb   :  { %v30_v30 = vld [vmem:[%s1492_s0 + $0x70] sm:$0xff]  ;;  %v31_v31 = vld [vmem:[%s1492_s0 + $0x78] sm:$0xff]  ;;  %v32_v33 = vld [vmem:[%s1492_s0 + $0x80] sm:$0xff] }
   0xc   :  { %358 = vmatpush.bf16.msra.mxu1 %v1087_v20  ;;  %v55_v32 = vpack.c.bf16 %v31_v31, %v30_v30  ;;  %v33_v34 = vld [vmem:[%s1492_s0 + $0x88] sm:$0xff]  ;;  %v1249_v35 = vld [vmem:[%s1494_s2] sm:$0xf]  ;;  %v34_v44 = vld [vmem:[%s1492_s0 + $0x90] sm:$0xff] }
   0xd   :  { %v56_v36 = vpack.c.bf16 %v33_v34, %v32_v33  ;;  %v1252_v38 = vperm.slane %v1249_v35, 0  ;;  %v35_v45 = vld [vmem:[%s1492_s0 + $0x98] sm:$0xff]  ;;  %v36_v56 = vld [vmem:[%s1492_s0 + $0xa0] sm:$0xff]  ;;  %v37_v57 = vld [vmem:[%s1492_s0 + $0xa8] sm:$0xff] }
   0xe   :  { %v57_v49 = vpack.c.bf16 %v35_v45, %v34_v44  ;;  %v58_v61 = vpack.c.bf16 %v37_v57, %v36_v56  ;;  %v38_v4 = vld [vmem:[%s1492_s0 + $0xb0] sm:$0xff]  ;;  %v39_v5 = vld [vmem:[%s1492_s0 + $0xb8] sm:$0xff]  ;;  %v40_v16 = vld [vmem:[%s1492_s0 + $0xc0] sm:$0xff] }
   0xf   :  { %v41_v17 = vld [vmem:[%s1492_s0 + $0xc8] sm:$0xff] }
  0x10   :  { %359 = vmatpush.bf16.msra.mxu1 %v1086_v21  ;;  %v60_v21 = vpack.c.bf16 %v41_v17, %v40_v16  ;;  %v1093_v56 = vld [vmem:[%s1493_s1 + $0x68] sm:$0xff] }
  0x14   :  { %360 = vmatpush.bf16.msra.mxu1 %v1085_v22 }
  0x15   :  { %969 = vmatmul.msk.bf16.gmra.mxu0 %vm74_vm0, %v49_v6 }
  0x18   :  { %361 = vmatpush.bf16.msra.mxu1 %v1084_v26 }
  0x1c   :  { %362 = vmatpush.bf16.msra.mxu1 %v1083_v27 }
  0x20   :  { %363 = vmatpush.bf16.msra.mxu1 %v1082_v28  ;;  %v42_v28 = vld [vmem:[%s1492_s0 + $0xd0] sm:$0xff] }
  0x24   :  { %364 = vmatpush.bf16.msra.mxu1 %v1081_v29  ;;  %v43_v29 = vld [vmem:[%s1492_s0 + $0xd8] sm:$0xff] }
  0x25   :  { %970 = vmatmul.msk.bf16.gmra.mxu0 %vm74_vm0, %v50_v9  ;;  %v59_v9 = vpack.c.bf16 %v39_v5, %v38_v4  ;;  %v61_v33 = vpack.c.bf16 %v43_v29, %v42_v28  ;;  %v1090_v4 = vld [vmem:[%s1493_s1 + $0x50] sm:$0xff] }
  0x35   :  { %971 = vmatmul.msk.bf16.gmra.mxu0 %vm74_vm0, %v51_v12 }
  0x45   :  { %972 = vmatmul.msk.bf16.gmra.mxu0 %vm74_vm0, %v52_v15 }
  0x55   :  { %973 = vmatmul.msk.bf16.gmra.mxu0 %vm74_vm0, %v53_v19 }
  0x65   :  { %974 = vmatmul.msk.bf16.gmra.mxu0 %vm74_vm0, %v54_v25 }
  0x75   :  { %975 = vmatmul.msk.bf16.gmra.mxu0 %vm74_vm0, %v55_v32 }
  0x82   :  { %v132_v37 = vpop.f32.mrf.mxu0 }
  0x83   :  { %v133_v39 = vadd.f32 %v132_v37, %v1252_v38 }
  0x85   :  { %976 = vmatmul.msk.bf16.gmra.mxu0 %vm74_vm0, %v56_v36  ;;  %v212_v41 = vmul.f32 0.01, %v133_v39 }
  0x87   :  { %v244_v46 = vmax.f32 %v133_v39, %v212_v41 }
  0x8a   :  { %v134_v40 = vpop.f32.mrf.mxu0 }
  0x8b   :  { %v135_v42 = vadd.f32 %v134_v40, %v1252_v38 }
  0x8d   :  { %v213_v43 = vmul.f32 0.01, %v135_v42 }
  0x8f   :  { %v245_v47 = vmax.f32 %v135_v42, %v213_v43  ;;  %v44_v42 = vld [vmem:[%s1492_s0 + $0xe0] sm:$0xff]  ;;  %v45_v43 = vld [vmem:[%s1492_s0 + $0xe8] sm:$0xff] }
  0x91   :  { %v276_v48 = vpack.c.bf16 %v245_v47, %v244_v46  ;;  %v1096_v46 = vld [vmem:[%s1493_s1 + $0x80] sm:$0xff] }
  0x92   :  { %v137_v50 = vpop.f32.mrf.mxu0  ;;  %591 = vmatpush.bf16.msra.mxu2 %v1096_v46 }
  0x93   :  { %365 = vmatmul.bf16.vlgmr.msra.gmra.mxu1 %v276_v48  ;;  %v138_v51 = vadd.f32 %v137_v50, %v1252_v38  ;;  %v62_v48 = vpack.c.bf16 %v45_v43, %v44_v42  ;;  %v1095_v50 = vld [vmem:[%s1493_s1 + $0x78] sm:$0xff] }
  0x95   :  { %977 = vmatmul.msk.bf16.gmra.mxu0 %vm74_vm0, %v57_v49  ;;  %v214_v53 = vmul.f32 0.01, %v138_v51 }
  0x96   :  { %592 = vmatpush.bf16.msra.mxu2 %v1095_v50 }
  0x97   :  { %v246_v58 = vmax.f32 %v138_v51, %v214_v53 }
  0x9a   :  { %v139_v52 = vpop.f32.mrf.mxu0 }
  0x9b   :  { %v140_v54 = vadd.f32 %v139_v52, %v1252_v38  ;;  %v1094_v52 = vld [vmem:[%s1493_s1 + $0x70] sm:$0xff] }
  0x9c   :  { %593 = vmatpush.bf16.msra.mxu2 %v1094_v52 }
  0x9d   :  { %v215_v55 = vmul.f32 0.01, %v140_v54 }
  0x9f   :  { %v247_v59 = vmax.f32 %v140_v54, %v215_v55 }
  0xa0   :  { %594 = vmatpush.bf16.msra.mxu2 %v1093_v56 }
  0xa1   :  { %v277_v60 = vpack.c.bf16 %v247_v59, %v246_v58  ;;  %v46_v58 = vld [vmem:[%s1492_s0 + $0xf0] sm:$0xff]  ;;  %v47_v59 = vld [vmem:[%s1492_s0 + $0xf8] sm:$0xff] }
  0xa2   :  { %v142_v62 = vpop.f32.mrf.mxu0 }
  0xa3   :  { %370 = vmatmul.bf16.gmra.mxu1 %v277_v60  ;;  %v143_v63 = vadd.f32 %v142_v62, %v1252_v38  ;;  %v1092_v62 = vld [vmem:[%s1493_s1 + $0x60] sm:$0xff] }
  0xa4   :  { %595 = vmatpush.bf16.msra.mxu2 %v1092_v62 }
  0xa5   :  { %978 = vmatmul.msk.bf16.gmra.mxu0 %vm74_vm0, %v58_v61  ;;  %v216_v1 = vmul.f32 0.01, %v143_v63 }
  0xa7   :  { %v248_v6 = vmax.f32 %v143_v63, %v216_v1 }
  0xaa   :  { %v144_v0 = vpop.f32.mrf.mxu0 }
  0xab   :  { %v145_v2 = vadd.f32 %v144_v0, %v1252_v38  ;;  %v63_v0 = vpack.c.bf16 %v47_v59, %v46_v58 }
  0xad   :  { %v217_v3 = vmul.f32 0.01, %v145_v2 }
  0xaf   :  { %v249_v7 = vmax.f32 %v145_v2, %v217_v3  ;;  %v1091_v2 = vld [vmem:[%s1493_s1 + $0x58] sm:$0xff] }
  0xb0   :  { %596 = vmatpush.bf16.msra.mxu2 %v1091_v2 }
  0xb1   :  { %v278_v8 = vpack.c.bf16 %v249_v7, %v248_v6 }
  0xb2   :  { %v147_v10 = vpop.f32.mrf.mxu0 }
  0xb3   :  { %375 = vmatmul.bf16.gmra.mxu1 %v278_v8  ;;  %v148_v11 = vadd.f32 %v147_v10, %v1252_v38  ;;  %v1089_v8 = vld [vmem:[%s1493_s1 + $0x48] sm:$0xff] }
  0xb4   :  { %597 = vmatpush.bf16.msra.mxu2 %v1090_v4 }
  0xb5   :  { %979 = vmatmul.msk.bf16.gmra.mxu0 %vm74_vm0, %v59_v9  ;;  %v218_v13 = vmul.f32 0.01, %v148_v11 }
  0xb7   :  { %v250_v18 = vmax.f32 %v148_v11, %v218_v13 }
  0xb8   :  { %598 = vmatpush.bf16.msra.mxu2 %v1089_v8 }
  0xba   :  { %v149_v12 = vpop.f32.mrf.mxu0 }
  0xbb   :  { %v150_v14 = vadd.f32 %v149_v12, %v1252_v38 }
  0xbd   :  { %v219_v15 = vmul.f32 0.01, %v150_v14 }
  0xbf   :  { %v251_v19 = vmax.f32 %v150_v14, %v219_v15 }
  0xc1   :  { %v279_v20 = vpack.c.bf16 %v251_v19, %v250_v18 }
  0xc2   :  { %v152_v22 = vpop.f32.mrf.mxu0 }
  0xc3   :  { %380 = vmatmul.bf16.gmra.mxu1 %v279_v20  ;;  %v153_v23 = vadd.f32 %v152_v22, %v1252_v38  ;;  %v1347_v22 = vperm.slane %v1249_v35, 1 }
  0xc5   :  { %980 = vmatmul.msk.bf16.gmra.mxu0 %vm74_vm0, %v60_v21  ;;  %v220_v25 = vmul.f32 0.01, %v153_v23 }
  0xc7   :  { %v252_v30 = vmax.f32 %v153_v23, %v220_v25 }
  0xca   :  { %v154_v24 = vpop.f32.mrf.mxu0 }
  0xcb   :  { %v155_v26 = vadd.f32 %v154_v24, %v1252_v38 }
  0xcd   :  { %v221_v27 = vmul.f32 0.01, %v155_v26 }
  0xcf   :  { %v253_v31 = vmax.f32 %v155_v26, %v221_v27 }
  0xd1   :  { %v280_v32 = vpack.c.bf16 %v253_v31, %v252_v30 }
  0xd2   :  { %v157_v34 = vpop.f32.mrf.mxu0 }
  0xd3   :  { %385 = vmatmul.bf16.gmra.mxu1 %v280_v32  ;;  %v158_v36 = vadd.f32 %v157_v34, %v1252_v38 }
  0xd5   :  { %981 = vmatmul.msk.bf16.gmra.mxu0 %vm74_vm0, %v61_v33  ;;  %v222_v39 = vmul.f32 0.01, %v158_v36 }
  0xd7   :  { %v254_v44 = vmax.f32 %v158_v36, %v222_v39 }
  0xda   :  { %v159_v37 = vpop.f32.mrf.mxu0 }
  0xdb   :  { %v160_v40 = vadd.f32 %v159_v37, %v1252_v38 }
  0xdd   :  { %v223_v41 = vmul.f32 0.01, %v160_v40 }
  0xdf   :  { %v255_v45 = vmax.f32 %v160_v40, %v223_v41 }
  0xe1   :  { %v281_v47 = vpack.c.bf16 %v255_v45, %v254_v44 }
  0xe2   :  { %v162_v49 = vpop.f32.mrf.mxu0 }
  0xe3   :  { %390 = vmatmul.bf16.gmra.mxu1 %v281_v47  ;;  %v163_v51 = vadd.f32 %v162_v49, %v1252_v38 }
  0xe5   :  { %982 = vmatmul.msk.bf16.gmra.mxu0 %vm74_vm0, %v62_v48  ;;  %v224_v54 = vmul.f32 0.01, %v163_v51 }
  0xe7   :  { %v256_v60 = vmax.f32 %v163_v51, %v224_v54 }
  0xea   :  { %v164_v53 = vpop.f32.mrf.mxu0 }
  0xeb   :  { %v165_v55 = vadd.f32 %v164_v53, %v1252_v38 }
  0xed   :  { %v225_v57 = vmul.f32 0.01, %v165_v55 }
  0xef   :  { %v257_v61 = vmax.f32 %v165_v55, %v225_v57 }
  0xf1   :  { %v282_v63 = vpack.c.bf16 %v257_v61, %v256_v60 }
  0xf2   :  { %v167_v1 = vpop.f32.mrf.mxu0 }
  0xf3   :  { %395 = vmatmul.bf16.gmra.mxu1 %v282_v63  ;;  %v168_v3 = vadd.f32 %v167_v1, %v1252_v38 }
  0xf5   :  { %983 = vmatmul.msk.bf16.gmra.mxu0 %vm74_vm0, %v63_v0  ;;  %v226_v6 = vmul.f32 0.01, %v168_v3 }
  0xf7   :  { %v258_v10 = vmax.f32 %v168_v3, %v226_v6 }
  0xfa   :  { %v169_v5 = vpop.f32.mrf.mxu0 }
  0xfb   :  { %v170_v7 = vadd.f32 %v169_v5, %v1252_v38 }
  0xfd   :  { %v227_v9 = vmul.f32 0.01, %v170_v7 }
  0xff   :  { %v259_v11 = vmax.f32 %v170_v7, %v227_v9 }
 0x101   :  { %v283_v12 = vpack.c.bf16 %v259_v11, %v258_v10 }
 0x102   :  { %v172_v13 = vpop.f32.mrf.mxu0 }
 0x103   :  { %400 = vmatmul.bf16.gmra.mxu1 %v283_v12  ;;  %v173_v14 = vadd.f32 %v172_v13, %v1252_v38 }
 0x105   :  { %v228_v16 = vmul.f32 0.01, %v173_v14 }
 0x107   :  { %v260_v19 = vmax.f32 %v173_v14, %v228_v16 }
 0x10a   :  { %v174_v15 = vpop.f32.mrf.mxu0 }
 0x10b   :  { %v175_v17 = vadd.f32 %v174_v15, %v1252_v38 }
 0x10d   :  { %v229_v18 = vmul.f32 0.01, %v175_v17 }
 0x10f   :  { %v261_v20 = vmax.f32 %v175_v17, %v229_v18 }
 0x110   :  { %v366_v21 = vpop.f32.mrf.mxu1 }
 0x111   :  { %v284_v23 = vpack.c.bf16 %v261_v20, %v260_v19  ;;  %v367_v25 = vadd.f32 %v366_v21, %v1347_v22 }
 0x112   :  { %v177_v24 = vpop.f32.mrf.mxu0 }
 0x113   :  { %405 = vmatmul.bf16.gmra.mxu1 %v284_v23  ;;  %v178_v26 = vadd.f32 %v177_v24, %v1252_v38  ;;  %v446_v28 = vmul.f32 0.01, %v367_v25 }
 0x115   :  { %v230_v31 = vmul.f32 0.01, %v178_v26  ;;  %v478_v34 = vmax.f32 %v367_v25, %v446_v28 }
 0x117   :  { %v262_v39 = vmax.f32 %v178_v26, %v230_v31 }
 0x118   :  { %v368_v27 = vpop.f32.mrf.mxu1 }
 0x119   :  { %v369_v29 = vadd.f32 %v368_v27, %v1347_v22 }
 0x11a   :  { %v179_v30 = vpop.f32.mrf.mxu0 }
 0x11b   :  { %v447_v32 = vmul.f32 0.01, %v369_v29  ;;  %v180_v33 = vadd.f32 %v179_v30, %v1252_v38 }
 0x11d   :  { %v231_v36 = vmul.f32 0.01, %v180_v33  ;;  %v479_v37 = vmax.f32 %v369_v29, %v447_v32 }
 0x11f   :  { %v263_v40 = vmax.f32 %v180_v33, %v231_v36  ;;  %v510_v41 = vpack.c.bf16 %v479_v37, %v478_v34 }
 0x120   :  { %v371_v42 = vpop.f32.mrf.mxu1 }
 0x121   :  { %599 = vmatmul.bf16.vlgmr.msra.gmra.mxu2 %v510_v41  ;;  %v285_v43 = vpack.c.bf16 %v263_v40, %v262_v39  ;;  %v372_v45 = vadd.f32 %v371_v42, %v1347_v22 }
 0x122   :  { %v182_v44 = vpop.f32.mrf.mxu0 }
 0x123   :  { %410 = vmatmul.bf16.gmra.mxu1 %v285_v43  ;;  %v183_v46 = vadd.f32 %v182_v44, %v1252_v38  ;;  %v448_v48 = vmul.f32 0.01, %v372_v45 }
 0x125   :  { %v232_v51 = vmul.f32 0.01, %v183_v46  ;;  %v480_v54 = vmax.f32 %v372_v45, %v448_v48 }
 0x127   :  { %v264_v57 = vmax.f32 %v183_v46, %v232_v51 }
 0x128   :  { %v373_v47 = vpop.f32.mrf.mxu1 }
 0x129   :  { %v374_v49 = vadd.f32 %v373_v47, %v1347_v22 }
 0x12a   :  { %v184_v50 = vpop.f32.mrf.mxu0 }
 0x12b   :  { %v449_v52 = vmul.f32 0.01, %v374_v49  ;;  %v185_v53 = vadd.f32 %v184_v50, %v1252_v38 }
 0x12d   :  { %v233_v55 = vmul.f32 0.01, %v185_v53  ;;  %v481_v56 = vmax.f32 %v374_v49, %v449_v52 }
 0x12f   :  { %v265_v58 = vmax.f32 %v185_v53, %v233_v55  ;;  %v511_v59 = vpack.c.bf16 %v481_v56, %v480_v54 }
 0x130   :  { %v376_v60 = vpop.f32.mrf.mxu1 }
 0x131   :  { %604 = vmatmul.bf16.gmra.mxu2 %v511_v59  ;;  %v286_v61 = vpack.c.bf16 %v265_v58, %v264_v57  ;;  %v377_v63 = vadd.f32 %v376_v60, %v1347_v22 }
 0x132   :  { %v187_v62 = vpop.f32.mrf.mxu0 }
 0x133   :  { %415 = vmatmul.bf16.gmra.mxu1 %v286_v61  ;;  %v188_v0 = vadd.f32 %v187_v62, %v1252_v38  ;;  %v450_v2 = vmul.f32 0.01, %v377_v63 }
 0x135   :  { %v234_v5 = vmul.f32 0.01, %v188_v0  ;;  %v482_v8 = vmax.f32 %v377_v63, %v450_v2 }
 0x137   :  { %v266_v11 = vmax.f32 %v188_v0, %v234_v5 }
 0x138   :  { %v378_v1 = vpop.f32.mrf.mxu1 }
 0x139   :  { %v379_v3 = vadd.f32 %v378_v1, %v1347_v22 }
 0x13a   :  { %v189_v4 = vpop.f32.mrf.mxu0 }
 0x13b   :  { %v451_v6 = vmul.f32 0.01, %v379_v3  ;;  %v190_v7 = vadd.f32 %v189_v4, %v1252_v38 }
 0x13d   :  { %v235_v9 = vmul.f32 0.01, %v190_v7  ;;  %v483_v10 = vmax.f32 %v379_v3, %v451_v6 }
 0x13f   :  { %v267_v12 = vmax.f32 %v190_v7, %v235_v9  ;;  %v512_v13 = vpack.c.bf16 %v483_v10, %v482_v8  ;;  %v1104_v10 = vld [vmem:[%s1493_s1 + $0xc0] sm:$0xff] }
 0x140   :  { %v381_v14 = vpop.f32.mrf.mxu1  ;;  %825 = vmatpush.bf16.msra.mxu3 %v1104_v10 }
 0x141   :  { %609 = vmatmul.bf16.gmra.mxu2 %v512_v13  ;;  %v287_v15 = vpack.c.bf16 %v267_v12, %v266_v11  ;;  %v382_v17 = vadd.f32 %v381_v14, %v1347_v22  ;;  %v1103_v14 = vld [vmem:[%s1493_s1 + $0xb8] sm:$0xff] }
 0x142   :  { %v192_v16 = vpop.f32.mrf.mxu0 }
 0x143   :  { %420 = vmatmul.bf16.gmra.mxu1 %v287_v15  ;;  %v193_v18 = vadd.f32 %v192_v16, %v1252_v38  ;;  %v452_v20 = vmul.f32 0.01, %v382_v17 }
 0x144   :  { %826 = vmatpush.bf16.msra.mxu3 %v1103_v14 }
 0x145   :  { %v236_v24 = vmul.f32 0.01, %v193_v18  ;;  %v484_v27 = vmax.f32 %v382_v17, %v452_v20 }
 0x147   :  { %v268_v30 = vmax.f32 %v193_v18, %v236_v24 }
 0x148   :  { %v383_v19 = vpop.f32.mrf.mxu1 }
 0x149   :  { %v384_v21 = vadd.f32 %v383_v19, %v1347_v22 }
 0x14a   :  { %v194_v23 = vpop.f32.mrf.mxu0 }
 0x14b   :  { %v453_v25 = vmul.f32 0.01, %v384_v21  ;;  %v195_v26 = vadd.f32 %v194_v23, %v1252_v38 }
 0x14d   :  { %v237_v28 = vmul.f32 0.01, %v195_v26  ;;  %v485_v29 = vmax.f32 %v384_v21, %v453_v25  ;;  %v1102_v21 = vld [vmem:[%s1493_s1 + $0xb0] sm:$0xff] }
 0x14e   :  { %827 = vmatpush.bf16.msra.mxu3 %v1102_v21 }
 0x14f   :  { %v269_v31 = vmax.f32 %v195_v26, %v237_v28  ;;  %v513_v32 = vpack.c.bf16 %v485_v29, %v484_v27 }
 0x150   :  { %v386_v33 = vpop.f32.mrf.mxu1 }
 0x151   :  { %614 = vmatmul.bf16.gmra.mxu2 %v513_v32  ;;  %v288_v34 = vpack.c.bf16 %v269_v31, %v268_v30  ;;  %v387_v37 = vadd.f32 %v386_v33, %v1347_v22  ;;  %v1101_v30 = vld [vmem:[%s1493_s1 + $0xa8] sm:$0xff] }
 0x152   :  { %v197_v36 = vpop.f32.mrf.mxu0  ;;  %828 = vmatpush.bf16.msra.mxu3 %v1101_v30 }
 0x153   :  { %425 = vmatmul.bf16.gmra.mxu1 %v288_v34  ;;  %v198_v39 = vadd.f32 %v197_v36, %v1252_v38  ;;  %v454_v41 = vmul.f32 0.01, %v387_v37  ;;  %v1099_v34 = vld [vmem:[%s1493_s1 + $0x98] sm:$0xff] }
 0x155   :  { %v238_v44 = vmul.f32 0.01, %v198_v39  ;;  %v486_v47 = vmax.f32 %v387_v37, %v454_v41 }
 0x157   :  { %v270_v50 = vmax.f32 %v198_v39, %v238_v44 }
 0x158   :  { %v388_v40 = vpop.f32.mrf.mxu1 }
 0x159   :  { %v389_v42 = vadd.f32 %v388_v40, %v1347_v22  ;;  %v1098_v40 = vld [vmem:[%s1493_s1 + $0x90] sm:$0xff] }
 0x15a   :  { %v199_v43 = vpop.f32.mrf.mxu0 }
 0x15b   :  { %v455_v45 = vmul.f32 0.01, %v389_v42  ;;  %v200_v46 = vadd.f32 %v199_v43, %v1252_v38 }
 0x15d   :  { %v487_v48 = vmax.f32 %v389_v42, %v455_v45  ;;  %v239_v49 = vmul.f32 0.01, %v200_v46  ;;  %v1097_v45 = vld [vmem:[%s1493_s1 + $0x88] sm:$0xff] }
 0x15f   :  { %v271_v51 = vmax.f32 %v200_v46, %v239_v49  ;;  %v514_v52 = vpack.c.bf16 %v487_v48, %v486_v47 }
 0x160   :  { %v391_v53 = vpop.f32.mrf.mxu1 }
 0x161   :  { %619 = vmatmul.bf16.gmra.mxu2 %v514_v52  ;;  %v289_v54 = vpack.c.bf16 %v271_v51, %v270_v50  ;;  %v392_v56 = vadd.f32 %v391_v53, %v1347_v22 }
 0x162   :  { %v202_v55 = vpop.f32.mrf.mxu0 }
 0x163   :  { %430 = vmatmul.bf16.gmra.mxu1 %v289_v54  ;;  %v203_v57 = vadd.f32 %v202_v55, %v1252_v38  ;;  %v456_v59 = vmul.f32 0.01, %v392_v56 }
 0x165   :  { %v240_v62 = vmul.f32 0.01, %v203_v57  ;;  %v488_v1 = vmax.f32 %v392_v56, %v456_v59 }
 0x167   :  { %v272_v4 = vmax.f32 %v203_v57, %v240_v62  ;;  %v1407_v57 = vperm.slane %v1249_v35, 2 }
 0x168   :  { %v393_v58 = vpop.f32.mrf.mxu1 }
 0x169   :  { %v394_v60 = vadd.f32 %v393_v58, %v1347_v22 }
 0x16a   :  { %v204_v61 = vpop.f32.mrf.mxu0 }
 0x16b   :  { %v457_v63 = vmul.f32 0.01, %v394_v60  ;;  %v205_v0 = vadd.f32 %v204_v61, %v1252_v38 }
 0x16d   :  { %v489_v2 = vmax.f32 %v394_v60, %v457_v63  ;;  %v241_v3 = vmul.f32 0.01, %v205_v0 }
 0x16f   :  { %v273_v5 = vmax.f32 %v205_v0, %v241_v3  ;;  %v515_v6 = vpack.c.bf16 %v489_v2, %v488_v1 }
 0x170   :  { %v396_v7 = vpop.f32.mrf.mxu1 }
 0x171   :  { %624 = vmatmul.bf16.gmra.mxu2 %v515_v6  ;;  %v290_v8 = vpack.c.bf16 %v273_v5, %v272_v4  ;;  %v397_v11 = vadd.f32 %v396_v7, %v1347_v22 }
 0x172   :  { %v207_v9 = vpop.f32.mrf.mxu0 }
 0x173   :  { %435 = vmatmul.bf16.gmra.mxu1 %v290_v8  ;;  %v208_v12 = vadd.f32 %v207_v9, %v1252_v38  ;;  %v458_v15 = vmul.f32 0.01, %v397_v11 }
 0x175   :  { %v242_v18 = vmul.f32 0.01, %v208_v12  ;;  %v490_v23 = vmax.f32 %v397_v11, %v458_v15 }
 0x177   :  { %v274_v26 = vmax.f32 %v208_v12, %v242_v18 }
 0x178   :  { %v398_v13 = vpop.f32.mrf.mxu1 }
 0x179   :  { %v399_v16 = vadd.f32 %v398_v13, %v1347_v22 }
 0x17a   :  { %v209_v17 = vpop.f32.mrf.mxu0 }
 0x17b   :  { %v459_v19 = vmul.f32 0.01, %v399_v16  ;;  %v210_v20 = vadd.f32 %v209_v17, %v1252_v38  ;;  %v1100_v38 = vld [vmem:[%s1493_s1 + $0xa0] sm:$0xff]  ;;  %s1134_s1 = smov [#allocation2]  }
 0x17c   :  { %829 = vmatpush.bf16.msra.mxu3 %v1100_v38  ;;  %s950_s16 = sshll.u32 %s1134_s1, 4  ;;  %s951_s16 = int_to_ptr.vmem [resolvable:$true] %s950_s16 }
 0x17d   :  { %v491_v24 = vmax.f32 %v399_v16, %v459_v19  ;;  %v243_v25 = vmul.f32 0.01, %v210_v20 }
 0x17f   :  { %v275_v27 = vmax.f32 %v210_v20, %v243_v25  ;;  %v516_v28 = vpack.c.bf16 %v491_v24, %v490_v23 }
 0x180   :  { %v401_v29 = vpop.f32.mrf.mxu1  ;;  %830 = vmatpush.bf16.msra.mxu3 %v1099_v34 }
 0x181   :  { %629 = vmatmul.bf16.gmra.mxu2 %v516_v28  ;;  %v291_v31 = vpack.c.bf16 %v275_v27, %v274_v26  ;;  %v402_v32 = vadd.f32 %v401_v29, %v1347_v22 }
 0x183   :  { %440 = vmatmul.bf16.gmra.mxu1 %v291_v31  ;;  %v460_v36 = vmul.f32 0.01, %v402_v32 }
 0x184   :  { %831 = vmatpush.bf16.msra.mxu3 %v1098_v40 }
 0x185   :  { %v492_v41 = vmax.f32 %v402_v32, %v460_v36 }
 0x188   :  { %v403_v33 = vpop.f32.mrf.mxu1  ;;  %832 = vmatpush.bf16.msra.mxu3 %v1097_v45 }
 0x189   :  { %v404_v37 = vadd.f32 %v403_v33, %v1347_v22 }
 0x18b   :  { %v461_v39 = vmul.f32 0.01, %v404_v37 }
 0x18d   :  { %v493_v42 = vmax.f32 %v404_v37, %v461_v39 }
 0x18f   :  { %v517_v43 = vpack.c.bf16 %v493_v42, %v492_v41 }
 0x190   :  { %v406_v44 = vpop.f32.mrf.mxu1 }
 0x191   :  { %634 = vmatmul.bf16.gmra.mxu2 %v517_v43  ;;  %v407_v46 = vadd.f32 %v406_v44, %v1347_v22 }
 0x193   :  { %v462_v48 = vmul.f32 0.01, %v407_v46 }
 0x195   :  { %v494_v51 = vmax.f32 %v407_v46, %v462_v48 }
 0x198   :  { %v408_v47 = vpop.f32.mrf.mxu1 }
 0x199   :  { %v409_v49 = vadd.f32 %v408_v47, %v1347_v22 }
 0x19b   :  { %v463_v50 = vmul.f32 0.01, %v409_v49 }
 0x19d   :  { %v495_v52 = vmax.f32 %v409_v49, %v463_v50 }
 0x19f   :  { %v518_v53 = vpack.c.bf16 %v495_v52, %v494_v51 }
 0x1a0   :  { %v411_v54 = vpop.f32.mrf.mxu1 }
 0x1a1   :  { %639 = vmatmul.bf16.gmra.mxu2 %v518_v53  ;;  %v412_v56 = vadd.f32 %v411_v54, %v1347_v22 }
 0x1a3   :  { %v464_v59 = vmul.f32 0.01, %v412_v56 }
 0x1a4   :  { %v600_v55 = vpop.f32.mrf.mxu2 }
 0x1a5   :  { %v601_v60 = vadd.f32 %v600_v55, %v1407_v57  ;;  %v496_v0 = vmax.f32 %v412_v56, %v464_v59 }
 0x1a7   :  { %v680_v1 = vmul.f32 0.01, %v601_v60 }
 0x1a8   :  { %v413_v58 = vpop.f32.mrf.mxu1 }
 0x1a9   :  { %v414_v61 = vadd.f32 %v413_v58, %v1347_v22  ;;  %v712_v7 = vmax.f32 %v601_v60, %v680_v1 }
 0x1ab   :  { %v465_v62 = vmul.f32 0.01, %v414_v61 }
 0x1ac   :  { %v602_v63 = vpop.f32.mrf.mxu2 }
 0x1ad   :  { %v497_v2 = vmax.f32 %v414_v61, %v465_v62  ;;  %v603_v3 = vadd.f32 %v602_v63, %v1407_v57 }
 0x1af   :  { %v681_v4 = vmul.f32 0.01, %v603_v3  ;;  %v519_v5 = vpack.c.bf16 %v497_v2, %v496_v0 }
 0x1b0   :  { %v416_v6 = vpop.f32.mrf.mxu1 }
 0x1b1   :  { %644 = vmatmul.bf16.gmra.mxu2 %v519_v5  ;;  %v713_v8 = vmax.f32 %v603_v3, %v681_v4  ;;  %v417_v11 = vadd.f32 %v416_v6, %v1347_v22 }
 0x1b3   :  { %v744_v9 = vpack.c.bf16 %v713_v8, %v712_v7  ;;  %v466_v13 = vmul.f32 0.01, %v417_v11 }
 0x1b4   :  { %v605_v10 = vpop.f32.mrf.mxu2 }
 0x1b5   :  { %833 = vmatmul.bf16.vlgmr.msra.gmra.mxu3 %v744_v9  ;;  %v606_v14 = vadd.f32 %v605_v10, %v1407_v57  ;;  %v498_v18 = vmax.f32 %v417_v11, %v466_v13 }
 0x1b7   :  { %v682_v19 = vmul.f32 0.01, %v606_v14 }
 0x1b8   :  { %v418_v12 = vpop.f32.mrf.mxu1 }
 0x1b9   :  { %v419_v15 = vadd.f32 %v418_v12, %v1347_v22  ;;  %v714_v26 = vmax.f32 %v606_v14, %v682_v19 }
 0x1bb   :  { %v467_v16 = vmul.f32 0.01, %v419_v15 }
 0x1bc   :  { %v607_v17 = vpop.f32.mrf.mxu2 }
 0x1bd   :  { %v499_v20 = vmax.f32 %v419_v15, %v467_v16  ;;  %v608_v21 = vadd.f32 %v607_v17, %v1407_v57 }
 0x1bf   :  { %v683_v23 = vmul.f32 0.01, %v608_v21  ;;  %v520_v24 = vpack.c.bf16 %v499_v20, %v498_v18 }
 0x1c0   :  { %v421_v25 = vpop.f32.mrf.mxu1 }
 0x1c1   :  { %649 = vmatmul.bf16.gmra.mxu2 %v520_v24  ;;  %v715_v27 = vmax.f32 %v608_v21, %v683_v23  ;;  %v422_v30 = vadd.f32 %v421_v25, %v1347_v22 }
 0x1c3   :  { %v745_v28 = vpack.c.bf16 %v715_v27, %v714_v26  ;;  %v468_v38 = vmul.f32 0.01, %v422_v30 }
 0x1c4   :  { %v610_v29 = vpop.f32.mrf.mxu2 }
 0x1c5   :  { %838 = vmatmul.bf16.gmra.mxu3 %v745_v28  ;;  %v611_v32 = vadd.f32 %v610_v29, %v1407_v57  ;;  %v500_v37 = vmax.f32 %v422_v30, %v468_v38 }
 0x1c7   :  { %v684_v39 = vmul.f32 0.01, %v611_v32 }
 0x1c8   :  { %v423_v31 = vpop.f32.mrf.mxu1 }
 0x1c9   :  { %v424_v33 = vadd.f32 %v423_v31, %v1347_v22  ;;  %v716_v45 = vmax.f32 %v611_v32, %v684_v39 }
 0x1cb   :  { %v469_v34 = vmul.f32 0.01, %v424_v33 }
 0x1cc   :  { %v612_v36 = vpop.f32.mrf.mxu2 }
 0x1cd   :  { %v501_v40 = vmax.f32 %v424_v33, %v469_v34  ;;  %v613_v41 = vadd.f32 %v612_v36, %v1407_v57 }
 0x1cf   :  { %v685_v42 = vmul.f32 0.01, %v613_v41  ;;  %v521_v43 = vpack.c.bf16 %v501_v40, %v500_v37 }
 0x1d0   :  { %v426_v44 = vpop.f32.mrf.mxu1 }
 0x1d1   :  { %654 = vmatmul.bf16.gmra.mxu2 %v521_v43  ;;  %v717_v46 = vmax.f32 %v613_v41, %v685_v42  ;;  %v427_v49 = vadd.f32 %v426_v44, %v1347_v22 }
 0x1d3   :  { %v746_v47 = vpack.c.bf16 %v717_v46, %v716_v45  ;;  %v470_v51 = vmul.f32 0.01, %v427_v49 }
 0x1d4   :  { %v615_v48 = vpop.f32.mrf.mxu2 }
 0x1d5   :  { %843 = vmatmul.bf16.gmra.mxu3 %v746_v47  ;;  %v616_v52 = vadd.f32 %v615_v48, %v1407_v57  ;;  %v502_v56 = vmax.f32 %v427_v49, %v470_v51 }
 0x1d7   :  { %v686_v58 = vmul.f32 0.01, %v616_v52 }
 0x1d8   :  { %v428_v50 = vpop.f32.mrf.mxu1 }
 0x1d9   :  { %v429_v53 = vadd.f32 %v428_v50, %v1347_v22  ;;  %v718_v0 = vmax.f32 %v616_v52, %v686_v58 }
 0x1db   :  { %v471_v54 = vmul.f32 0.01, %v429_v53 }
 0x1dc   :  { %v617_v55 = vpop.f32.mrf.mxu2 }
 0x1dd   :  { %v503_v59 = vmax.f32 %v429_v53, %v471_v54  ;;  %v618_v60 = vadd.f32 %v617_v55, %v1407_v57 }
 0x1df   :  { %v687_v61 = vmul.f32 0.01, %v618_v60  ;;  %v522_v62 = vpack.c.bf16 %v503_v59, %v502_v56 }
 0x1e0   :  { %v431_v63 = vpop.f32.mrf.mxu1 }
 0x1e1   :  { %659 = vmatmul.bf16.gmra.mxu2 %v522_v62  ;;  %v719_v1 = vmax.f32 %v618_v60, %v687_v61  ;;  %v432_v4 = vadd.f32 %v431_v63, %v1347_v22 }
 0x1e3   :  { %v747_v2 = vpack.c.bf16 %v719_v1, %v718_v0  ;;  %v472_v6 = vmul.f32 0.01, %v432_v4 }
 0x1e4   :  { %v620_v3 = vpop.f32.mrf.mxu2 }
 0x1e5   :  { %848 = vmatmul.bf16.gmra.mxu3 %v747_v2  ;;  %v621_v7 = vadd.f32 %v620_v3, %v1407_v57  ;;  %v504_v11 = vmax.f32 %v432_v4, %v472_v6 }
 0x1e7   :  { %v688_v12 = vmul.f32 0.01, %v621_v7 }
 0x1e8   :  { %v433_v5 = vpop.f32.mrf.mxu1 }
 0x1e9   :  { %v434_v8 = vadd.f32 %v433_v5, %v1347_v22  ;;  %v720_v18 = vmax.f32 %v621_v7, %v688_v12 }
 0x1eb   :  { %v473_v9 = vmul.f32 0.01, %v434_v8 }
 0x1ec   :  { %v622_v10 = vpop.f32.mrf.mxu2 }
 0x1ed   :  { %v505_v13 = vmax.f32 %v434_v8, %v473_v9  ;;  %v623_v14 = vadd.f32 %v622_v10, %v1407_v57 }
 0x1ef   :  { %v689_v15 = vmul.f32 0.01, %v623_v14  ;;  %v523_v16 = vpack.c.bf16 %v505_v13, %v504_v11  ;;  %v1441_v13 = vperm.slane %v1249_v35, 3 }
 0x1f0   :  { %v436_v17 = vpop.f32.mrf.mxu1 }
 0x1f1   :  { %v721_v19 = vmax.f32 %v623_v14, %v689_v15  ;;  %664 = vmatmul.bf16.gmra.mxu2 %v523_v16  ;;  %v437_v23 = vadd.f32 %v436_v17, %v1347_v22 }
 0x1f3   :  { %v748_v20 = vpack.c.bf16 %v721_v19, %v720_v18  ;;  %v474_v25 = vmul.f32 0.01, %v437_v23 }
 0x1f4   :  { %v625_v21 = vpop.f32.mrf.mxu2 }
 0x1f5   :  { %853 = vmatmul.bf16.gmra.mxu3 %v748_v20  ;;  %v626_v26 = vadd.f32 %v625_v21, %v1407_v57  ;;  %v506_v30 = vmax.f32 %v437_v23, %v474_v25 }
 0x1f7   :  { %v690_v31 = vmul.f32 0.01, %v626_v26 }
 0x1f8   :  { %v438_v24 = vpop.f32.mrf.mxu1 }
 0x1f9   :  { %v439_v27 = vadd.f32 %v438_v24, %v1347_v22  ;;  %v722_v37 = vmax.f32 %v626_v26, %v690_v31 }
 0x1fb   :  { %v475_v28 = vmul.f32 0.01, %v439_v27 }
 0x1fc   :  { %v627_v29 = vpop.f32.mrf.mxu2 }
 0x1fd   :  { %v507_v38 = vmax.f32 %v439_v27, %v475_v28  ;;  %v628_v32 = vadd.f32 %v627_v29, %v1407_v57 }
 0x1ff   :  { %v691_v33 = vmul.f32 0.01, %v628_v32  ;;  %v524_v34 = vpack.c.bf16 %v507_v38, %v506_v30 }
 0x200   :  { %v441_v36 = vpop.f32.mrf.mxu1 }
 0x201   :  { %v723_v39 = vmax.f32 %v628_v32, %v691_v33  ;;  %669 = vmatmul.bf16.gmra.mxu2 %v524_v34  ;;  %v442_v42 = vadd.f32 %v441_v36, %v1347_v22 }
 0x203   :  { %v749_v40 = vpack.c.bf16 %v723_v39, %v722_v37  ;;  %v476_v44 = vmul.f32 0.01, %v442_v42 }
 0x204   :  { %v630_v41 = vpop.f32.mrf.mxu2 }
 0x205   :  { %858 = vmatmul.bf16.gmra.mxu3 %v749_v40  ;;  %v631_v45 = vadd.f32 %v630_v41, %v1407_v57  ;;  %v508_v49 = vmax.f32 %v442_v42, %v476_v44 }
 0x207   :  { %v692_v50 = vmul.f32 0.01, %v631_v45 }
 0x208   :  { %v443_v43 = vpop.f32.mrf.mxu1 }
 0x209   :  { %v444_v46 = vadd.f32 %v443_v43, %v1347_v22  ;;  %v724_v55 = vmax.f32 %v631_v45, %v692_v50 }
 0x20b   :  { %v477_v47 = vmul.f32 0.01, %v444_v46 }
 0x20c   :  { %v632_v48 = vpop.f32.mrf.mxu2 }
 0x20d   :  { %v509_v51 = vmax.f32 %v444_v46, %v477_v47  ;;  %v633_v52 = vadd.f32 %v632_v48, %v1407_v57 }
 0x20f   :  { %v693_v53 = vmul.f32 0.01, %v633_v52  ;;  %v525_v54 = vpack.c.bf16 %v509_v51, %v508_v49 }
 0x211   :  { %v725_v56 = vmax.f32 %v633_v52, %v693_v53  ;;  %674 = vmatmul.bf16.gmra.mxu2 %v525_v54 }
 0x213   :  { %v750_v58 = vpack.c.bf16 %v725_v56, %v724_v55 }
 0x214   :  { %v635_v59 = vpop.f32.mrf.mxu2 }
 0x215   :  { %863 = vmatmul.bf16.gmra.mxu3 %v750_v58  ;;  %v636_v60 = vadd.f32 %v635_v59, %v1407_v57 }
 0x217   :  { %v694_v62 = vmul.f32 0.01, %v636_v60 }
 0x219   :  { %v726_v0 = vmax.f32 %v636_v60, %v694_v62 }
 0x21c   :  { %v637_v61 = vpop.f32.mrf.mxu2 }
 0x21d   :  { %v638_v22 = vadd.f32 %v637_v61, %v1407_v57 }
 0x21f   :  { %v695_v63 = vmul.f32 0.01, %v638_v22 }
 0x221   :  { %v727_v1 = vmax.f32 %v638_v22, %v695_v63 }
 0x223   :  { %v751_v2 = vpack.c.bf16 %v727_v1, %v726_v0 }
 0x224   :  { %v640_v3 = vpop.f32.mrf.mxu2 }
 0x225   :  { %868 = vmatmul.bf16.gmra.mxu3 %v751_v2  ;;  %v641_v4 = vadd.f32 %v640_v3, %v1407_v57 }
 0x227   :  { %v696_v6 = vmul.f32 0.01, %v641_v4 }
 0x229   :  { %v728_v9 = vmax.f32 %v641_v4, %v696_v6 }
 0x22c   :  { %v642_v5 = vpop.f32.mrf.mxu2 }
 0x22d   :  { %v643_v7 = vadd.f32 %v642_v5, %v1407_v57 }
 0x22f   :  { %v697_v8 = vmul.f32 0.01, %v643_v7 }
 0x231   :  { %v729_v10 = vmax.f32 %v643_v7, %v697_v8 }
 0x233   :  { %v752_v11 = vpack.c.bf16 %v729_v10, %v728_v9 }
 0x234   :  { %v645_v12 = vpop.f32.mrf.mxu2 }
 0x235   :  { %873 = vmatmul.bf16.gmra.mxu3 %v752_v11  ;;  %v646_v15 = vadd.f32 %v645_v12, %v1407_v57 }
 0x237   :  { %v698_v18 = vmul.f32 0.01, %v646_v15 }
 0x238   :  { %v834_v14 = vpop.f32.mrf.mxu3 }
 0x239   :  { %v835_v16 = vadd.f32 %v834_v14, %v1441_v13  ;;  %v730_v23 = vmax.f32 %v646_v15, %v698_v18 }
 0x23b   :  { %914 = vst [vmem:[#allocation2] sm:$0xff] %v835_v16 }
 0x23c   :  { %v647_v17 = vpop.f32.mrf.mxu2 }
 0x23d   :  { %v648_v19 = vadd.f32 %v647_v17, %v1407_v57 }
 0x23f   :  { %v699_v20 = vmul.f32 0.01, %v648_v19 }
 0x240   :  { %v836_v21 = vpop.f32.mrf.mxu3 }
 0x241   :  { %v731_v24 = vmax.f32 %v648_v19, %v699_v20  ;;  %v837_v25 = vadd.f32 %v836_v21, %v1441_v13 }
 0x243   :  { %915 = vst [vmem:[#allocation2 + $0x8] sm:$0xff] %v837_v25  ;;  %v753_v26 = vpack.c.bf16 %v731_v24, %v730_v23 }
 0x244   :  { %v650_v35 = vpop.f32.mrf.mxu2 }
 0x245   :  { %878 = vmatmul.bf16.gmra.mxu3 %v753_v26  ;;  %v651_v28 = vadd.f32 %v650_v35, %v1407_v57 }
 0x247   :  { %v700_v31 = vmul.f32 0.01, %v651_v28 }
 0x248   :  { %v839_v27 = vpop.f32.mrf.mxu3 }
 0x249   :  { %v840_v29 = vadd.f32 %v839_v27, %v1441_v13  ;;  %v732_v34 = vmax.f32 %v651_v28, %v700_v31 }
 0x24b   :  { %916 = vst [vmem:[#allocation2 + $0x10] sm:$0xff] %v840_v29 }
 0x24c   :  { %v652_v30 = vpop.f32.mrf.mxu2 }
 0x24d   :  { %v653_v38 = vadd.f32 %v652_v30, %v1407_v57 }
 0x24f   :  { %v701_v32 = vmul.f32 0.01, %v653_v38 }
 0x250   :  { %v841_v33 = vpop.f32.mrf.mxu3 }
 0x251   :  { %v733_v36 = vmax.f32 %v653_v38, %v701_v32  ;;  %v842_v37 = vadd.f32 %v841_v33, %v1441_v13 }
 0x253   :  { %917 = vst [vmem:[#allocation2 + $0x18] sm:$0xff] %v842_v37  ;;  %v754_v39 = vpack.c.bf16 %v733_v36, %v732_v34 }
 0x254   :  { %v655_v40 = vpop.f32.mrf.mxu2 }
 0x255   :  { %883 = vmatmul.bf16.gmra.mxu3 %v754_v39  ;;  %v656_v42 = vadd.f32 %v655_v40, %v1407_v57 }
 0x257   :  { %v702_v45 = vmul.f32 0.01, %v656_v42 }
 0x258   :  { %v844_v41 = vpop.f32.mrf.mxu3 }
 0x259   :  { %v845_v43 = vadd.f32 %v844_v41, %v1441_v13  ;;  %v734_v49 = vmax.f32 %v656_v42, %v702_v45 }
 0x25b   :  { %918 = vst [vmem:[#allocation2 + $0x20] sm:$0xff] %v845_v43 }
 0x25c   :  { %v657_v44 = vpop.f32.mrf.mxu2 }
 0x25d   :  { %v658_v46 = vadd.f32 %v657_v44, %v1407_v57 }
 0x25f   :  { %v703_v47 = vmul.f32 0.01, %v658_v46 }
 0x260   :  { %v846_v48 = vpop.f32.mrf.mxu3 }
 0x261   :  { %v735_v50 = vmax.f32 %v658_v46, %v703_v47  ;;  %v847_v51 = vadd.f32 %v846_v48, %v1441_v13 }
 0x263   :  { %919 = vst [vmem:[#allocation2 + $0x28] sm:$0xff] %v847_v51  ;;  %v755_v52 = vpack.c.bf16 %v735_v50, %v734_v49 }
 0x264   :  { %v660_v53 = vpop.f32.mrf.mxu2 }
 0x265   :  { %888 = vmatmul.bf16.gmra.mxu3 %v755_v52  ;;  %v661_v55 = vadd.f32 %v660_v53, %v1407_v57 }
 0x267   :  { %v704_v59 = vmul.f32 0.01, %v661_v55 }
 0x268   :  { %v849_v54 = vpop.f32.mrf.mxu3 }
 0x269   :  { %v850_v56 = vadd.f32 %v849_v54, %v1441_v13  ;;  %v736_v22 = vmax.f32 %v661_v55, %v704_v59 }
 0x26b   :  { %920 = vst [vmem:[#allocation2 + $0x30] sm:$0xff] %v850_v56 }
 0x26c   :  { %v662_v58 = vpop.f32.mrf.mxu2 }
 0x26d   :  { %v663_v60 = vadd.f32 %v662_v58, %v1407_v57 }
 0x26f   :  { %v705_v61 = vmul.f32 0.01, %v663_v60 }
 0x270   :  { %v851_v62 = vpop.f32.mrf.mxu3 }
 0x271   :  { %v737_v63 = vmax.f32 %v663_v60, %v705_v61  ;;  %v852_v0 = vadd.f32 %v851_v62, %v1441_v13 }
 0x273   :  { %921 = vst [vmem:[#allocation2 + $0x38] sm:$0xff] %v852_v0  ;;  %v756_v1 = vpack.c.bf16 %v737_v63, %v736_v22 }
 0x274   :  { %v665_v2 = vpop.f32.mrf.mxu2 }
 0x275   :  { %893 = vmatmul.bf16.gmra.mxu3 %v756_v1  ;;  %v666_v4 = vadd.f32 %v665_v2, %v1407_v57 }
 0x277   :  { %v706_v7 = vmul.f32 0.01, %v666_v4 }
 0x278   :  { %v854_v3 = vpop.f32.mrf.mxu3 }
 0x279   :  { %v855_v5 = vadd.f32 %v854_v3, %v1441_v13  ;;  %v738_v11 = vmax.f32 %v666_v4, %v706_v7 }
 0x27b   :  { %922 = vst [vmem:[#allocation2 + $0x40] sm:$0xff] %v855_v5 }
 0x27c   :  { %v667_v6 = vpop.f32.mrf.mxu2 }
 0x27d   :  { %v668_v8 = vadd.f32 %v667_v6, %v1407_v57 }
 0x27f   :  { %v707_v9 = vmul.f32 0.01, %v668_v8 }
 0x280   :  { %v856_v10 = vpop.f32.mrf.mxu3 }
 0x281   :  { %v739_v12 = vmax.f32 %v668_v8, %v707_v9  ;;  %v857_v14 = vadd.f32 %v856_v10, %v1441_v13 }
 0x283   :  { %923 = vst [vmem:[#allocation2 + $0x48] sm:$0xff] %v857_v14  ;;  %v757_v15 = vpack.c.bf16 %v739_v12, %v738_v11 }
 0x284   :  { %v670_v16 = vpop.f32.mrf.mxu2 }
 0x285   :  { %898 = vmatmul.bf16.gmra.mxu3 %v757_v15  ;;  %v671_v18 = vadd.f32 %v670_v16, %v1407_v57 }
 0x287   :  { %v708_v21 = vmul.f32 0.01, %v671_v18 }
 0x288   :  { %v859_v17 = vpop.f32.mrf.mxu3 }
 0x289   :  { %v860_v19 = vadd.f32 %v859_v17, %v1441_v13  ;;  %v740_v26 = vmax.f32 %v671_v18, %v708_v21 }
 0x28b   :  { %924 = vst [vmem:[#allocation2 + $0x50] sm:$0xff] %v860_v19 }
 0x28c   :  { %v672_v20 = vpop.f32.mrf.mxu2 }
 0x28d   :  { %v673_v23 = vadd.f32 %v672_v20, %v1407_v57 }
 0x28f   :  { %v709_v24 = vmul.f32 0.01, %v673_v23 }
 0x290   :  { %v861_v25 = vpop.f32.mrf.mxu3 }
 0x291   :  { %v741_v35 = vmax.f32 %v673_v23, %v709_v24  ;;  %v862_v27 = vadd.f32 %v861_v25, %v1441_v13 }
 0x293   :  { %925 = vst [vmem:[#allocation2 + $0x58] sm:$0xff] %v862_v27  ;;  %v758_v28 = vpack.c.bf16 %v741_v35, %v740_v26 }
 0x294   :  { %v675_v29 = vpop.f32.mrf.mxu2 }
 0x295   :  { %903 = vmatmul.bf16.gmra.mxu3 %v758_v28  ;;  %v676_v31 = vadd.f32 %v675_v29, %v1407_v57 }
 0x297   :  { %v710_v33 = vmul.f32 0.01, %v676_v31 }
 0x298   :  { %v864_v30 = vpop.f32.mrf.mxu3 }
 0x299   :  { %v865_v38 = vadd.f32 %v864_v30, %v1441_v13  ;;  %v742_v39 = vmax.f32 %v676_v31, %v710_v33 }
 0x29b   :  { %926 = vst [vmem:[#allocation2 + $0x60] sm:$0xff] %v865_v38 }
 0x29c   :  { %v677_v32 = vpop.f32.mrf.mxu2 }
 0x29d   :  { %v678_v34 = vadd.f32 %v677_v32, %v1407_v57 }
 0x29f   :  { %v711_v36 = vmul.f32 0.01, %v678_v34 }
 0x2a0   :  { %v866_v37 = vpop.f32.mrf.mxu3 }
 0x2a1   :  { %v743_v40 = vmax.f32 %v678_v34, %v711_v36  ;;  %v867_v41 = vadd.f32 %v866_v37, %v1441_v13 }
 0x2a3   :  { %927 = vst [vmem:[#allocation2 + $0x68] sm:$0xff] %v867_v41  ;;  %v759_v42 = vpack.c.bf16 %v743_v40, %v742_v39 }
 0x2a5   :  { %908 = vmatmul.bf16.gmra.mxu3 %v759_v42 }
 0x2a8   :  { %v869_v43 = vpop.f32.mrf.mxu3 }
 0x2a9   :  { %v870_v44 = vadd.f32 %v869_v43, %v1441_v13 }
 0x2ab   :  { %928 = vst [vmem:[#allocation2 + $0x70] sm:$0xff] %v870_v44 }
 0x2b0   :  { %v871_v45 = vpop.f32.mrf.mxu3 }
 0x2b1   :  { %v872_v46 = vadd.f32 %v871_v45, %v1441_v13 }
 0x2b3   :  { %929 = vst [vmem:[#allocation2 + $0x78] sm:$0xff] %v872_v46 }
 0x2b8   :  { %v874_v47 = vpop.f32.mrf.mxu3 }
 0x2b9   :  { %v875_v57 = vadd.f32 %v874_v47, %v1441_v13 }
 0x2bb   :  { %930 = vst [vmem:[#allocation2 + $0x80] sm:$0xff] %v875_v57 }
 0x2c0   :  { %v876_v48 = vpop.f32.mrf.mxu3 }
 0x2c1   :  { %v877_v49 = vadd.f32 %v876_v48, %v1441_v13 }
 0x2c3   :  { %931 = vst [vmem:[#allocation2 + $0x88] sm:$0xff] %v877_v49 }
 0x2c8   :  { %v879_v50 = vpop.f32.mrf.mxu3 }
 0x2c9   :  { %v880_v51 = vadd.f32 %v879_v50, %v1441_v13 }
 0x2cb   :  { %932 = vst [vmem:[#allocation2 + $0x90] sm:$0xff] %v880_v51 }
 0x2d0   :  { %v881_v52 = vpop.f32.mrf.mxu3 }
 0x2d1   :  { %v882_v53 = vadd.f32 %v881_v52, %v1441_v13 }
 0x2d3   :  { %933 = vst [vmem:[#allocation2 + $0x98] sm:$0xff] %v882_v53 }
 0x2d8   :  { %v884_v54 = vpop.f32.mrf.mxu3 }
 0x2d9   :  { %v885_v55 = vadd.f32 %v884_v54, %v1441_v13 }
 0x2db   :  { %934 = vst [vmem:[#allocation2 + $0xa0] sm:$0xff] %v885_v55 }
 0x2e0   :  { %v886_v56 = vpop.f32.mrf.mxu3 }
 0x2e1   :  { %v887_v58 = vadd.f32 %v886_v56, %v1441_v13 }
 0x2e3   :  { %935 = vst [vmem:[#allocation2 + $0xa8] sm:$0xff] %v887_v58 }
 0x2e8   :  { %v889_v59 = vpop.f32.mrf.mxu3 }
 0x2e9   :  { %v890_v60 = vadd.f32 %v889_v59, %v1441_v13 }
 0x2eb   :  { %936 = vst [vmem:[#allocation2 + $0xb0] sm:$0xff] %v890_v60 }
 0x2f0   :  { %v891_v61 = vpop.f32.mrf.mxu3 }
 0x2f1   :  { %v892_v62 = vadd.f32 %v891_v61, %v1441_v13 }
 0x2f3   :  { %937 = vst [vmem:[#allocation2 + $0xb8] sm:$0xff] %v892_v62 }
 0x2f8   :  { %v894_v22 = vpop.f32.mrf.mxu3 }
 0x2f9   :  { %v895_v63 = vadd.f32 %v894_v22, %v1441_v13 }
 0x2fb   :  { %938 = vst [vmem:[#allocation2 + $0xc0] sm:$0xff] %v895_v63 }
 0x300   :  { %v896_v0 = vpop.f32.mrf.mxu3 }
 0x301   :  { %v897_v1 = vadd.f32 %v896_v0, %v1441_v13 }
 0x303   :  { %939 = vst [vmem:[#allocation2 + $0xc8] sm:$0xff] %v897_v1 }
 0x308   :  { %v899_v2 = vpop.f32.mrf.mxu3 }
 0x309   :  { %v900_v3 = vadd.f32 %v899_v2, %v1441_v13 }
 0x30b   :  { %940 = vst [vmem:[#allocation2 + $0xd0] sm:$0xff] %v900_v3 }
 0x310   :  { %v901_v4 = vpop.f32.mrf.mxu3 }
 0x311   :  { %v902_v5 = vadd.f32 %v901_v4, %v1441_v13 }
 0x313   :  { %941 = vst [vmem:[#allocation2 + $0xd8] sm:$0xff] %v902_v5 }
 0x318   :  { %v904_v6 = vpop.f32.mrf.mxu3 }
 0x319   :  { %v905_v7 = vadd.f32 %v904_v6, %v1441_v13 }
 0x31b   :  { %942 = vst [vmem:[#allocation2 + $0xe0] sm:$0xff] %v905_v7 }
 0x320   :  { %v906_v8 = vpop.f32.mrf.mxu3 }
 0x321   :  { %v907_v9 = vadd.f32 %v906_v8, %v1441_v13 }
 0x323   :  { %943 = vst [vmem:[#allocation2 + $0xe8] sm:$0xff] %v907_v9 }
 0x328   :  { %v909_v10 = vpop.f32.mrf.mxu3 }
 0x329   :  { %v910_v11 = vadd.f32 %v909_v10, %v1441_v13 }
 0x32b   :  { %944 = vst [vmem:[#allocation2 + $0xf0] sm:$0xff] %v910_v11 }
 0x330   :  { %v911_v12 = vpop.f32.mrf.mxu3 }
 0x331   :  { %v912_v14 = vadd.f32 %v911_v12, %v1441_v13 }
 0x333   :  { %945 = vst [vmem:[#allocation2 + $0xf8] sm:$0xff] %v912_v14 }
 0x334   :  { %958 = dma.vmem_to_hbm [thread:$0]  %s951_s16, 4096, %s953_s19, [#allocation3], %s1135_s20, %s1135_s20, %s1136_s21  }
 0x335   :  { %1132 = dma.done.wait [#allocation3], 4096  }
 0x336   :  { %1133 = vsyncadd [#allocation3], 4294963200 }
 0x337   :  { %963 = vsyncpa [#allocation3], 1 }

</bundles_post_ra>
